<compile_context>
chip_gen: v6e
topology: v6e:2x2x1
jax: 0.10.0
libtpu: 0.0.40
codegen_flags: <defaults>
</compile_context>

<pallas_src>
import math

import jax
import jax.numpy as jnp
from jax.experimental import pallas as pl
from jax.experimental.pallas import tpu as pltpu

LMAX = 3
NFEAT = (LMAX + 1) ** 2       # 16
LANE = 128                    # TPU lane width: flattened points map here
ROW_Q = 16                    # row quantum keeps (rows,128) blocks legal for f32/bf16/f16
CHUNK_ROWS = 64               # in-kernel sub-block (bounds VMEM temporaries)

# Real spherical-harmonic normalization constants (unit-sphere convention).
C0_0 = 0.5 * math.sqrt(1.0 / math.pi)
C1 = math.sqrt(3.0 / (4.0 * math.pi))
C2_M = 0.5 * math.sqrt(15.0 / math.pi)      # m = -2, -1, +1
C2_0 = 0.25 * math.sqrt(5.0 / math.pi)
C2_P2 = 0.25 * math.sqrt(15.0 / math.pi)
C3_3 = 0.25 * math.sqrt(35.0 / (2.0 * math.pi))
C3_M2 = 0.5 * math.sqrt(105.0 / math.pi)
C3_1 = 0.25 * math.sqrt(21.0 / (2.0 * math.pi))
C3_0 = 0.25 * math.sqrt(7.0 / math.pi)
C3_P2 = 0.25 * math.sqrt(105.0 / math.pi)


def _make_kernel(chunk_rows, n_chunks):
    """Kernel over blocks xin:(3,TR,128) f32  ->  out:(NFEAT,TR,128) out_dtype."""

    def kernel(xin_ref, out_ref):
        odt = out_ref.dtype

        def chunk_body(i, carry):
            r0 = pl.multiple_of(i * chunk_rows, chunk_rows)
            rows = pl.ds(r0, chunk_rows)

            # Module's reorder ix=[2,0,1]: sphericart (x, y, z) = (c2, c0, c1).
            xs = xin_ref[2, rows, :]
            ys = xin_ref[0, rows, :]
            zs = xin_ref[1, rows, :]

            # normalized=True: evaluate on the unit direction.  Zero-length
            # vectors (incl. padding rows) get rinv = 0, so every l>0 feature
            # is already 0 except feature 6 (constant term), matching
            # nan_to_num on the 0/0 NaNs of the reference.
            r2 = xs * xs + ys * ys + zs * zs
            zero = r2 == 0.0
            rinv = jnp.where(zero, 0.0, jax.lax.rsqrt(r2))   # rsqrt -> EUP slot
            x = xs * rinv
            y = ys * rinv
            z = zs * rinv

            x2, y2, z2 = x * x, y * y, z * z
            xy, yz, xz = x * y, y * z, x * z
            d = x2 - y2                      # shared by l=2,m=+2 and l=3,m=+2
            t = 5.0 * z2 - 1.0               # shared by l=3,m=+/-1

            def put(f, val):
                out_ref[f, rows, :] = val.astype(odt)

            # l = 0: constant (reference's nan_to_num leaves it alone).
            out_ref[0, rows, :] = jnp.full(r2.shape, C0_0, dtype=odt)
            put(1, C1 * y)                               # l=1, m=-1
            put(2, C1 * z)                               # l=1, m=0
            put(3, C1 * x)                               # l=1, m=+1
            put(4, C2_M * xy)                            # l=2, m=-2
            put(5, C2_M * yz)                            # l=2, m=-1
            put(6, jnp.where(zero, 0.0, C2_0 * (3.0 * z2 - 1.0)))  # l=2, m=0
            put(7, C2_M * xz)                            # l=2, m=+1
            put(8, C2_P2 * d)                            # l=2, m=+2
            put(9, C3_3 * y * (3.0 * x2 - y2))           # l=3, m=-3
            put(10, C3_M2 * xy * z)                      # l=3, m=-2
            put(11, C3_1 * y * t)                        # l=3, m=-1
            put(12, C3_0 * z * (5.0 * z2 - 3.0))         # l=3, m=0
            put(13, C3_1 * x * t)                        # l=3, m=+1
            put(14, C3_P2 * z * d)                       # l=3, m=+2
            put(15, C3_3 * x * (x2 - 3.0 * y2))          # l=3, m=+3
            return carry

        jax.lax.fori_loop(0, n_chunks, chunk_body, 0)

    return kernel


def _round_up(v, q):
    return -(-v // q) * q


def _select_tiling():
    """Per-generation (tile_rows, vmem_limit_bytes); conservative fallback."""
    try:
        info = pltpu.get_tpu_info()
        vmem = getattr(info, "vmem_capacity_bytes", None)
    except Exception:
        vmem = None
    if vmem is None:
        return 512, 32 * 1024 * 1024            # safe everywhere
    if vmem >= 100 * 1024 * 1024:                # v5e / v6e: 128 MiB VMEM
        return 2048, 96 * 1024 * 1024
    return 1024, 48 * 1024 * 1024                # v7x: 64 MiB per TensorCore


def spherical_harmonic(x, *, tile_rows=None, out_dtype=None, feature_major=False):
    """Pallas-backed equivalent of SphericalHarmonic(lmax=3, normalized=True).

    feature_major=False (default): returns (..., n, 16) like the module
    (requires an XLA transpose of the kernel's feature-major output).
    feature_major=True: returns (16, ..., n) with NO epilogue transpose — use
    this when the consumer (e.g. the following tensor product) can fuse the
    relayout; it is the single biggest HBM saving for this op.
    """
    *b, n, three = x.shape
    assert three == 3, "last dimension must be 3 (coordinates)"
    orig_dtype = x.dtype

    if out_dtype is None:
        if (orig_dtype == jnp.float32 or orig_dtype == jnp.bfloat16
                or orig_dtype == jnp.float16):
            store_dtype = orig_dtype
        else:
            store_dtype = jnp.float32
        ret_dtype = orig_dtype
    else:
        store_dtype = jnp.dtype(out_dtype)
        assert store_dtype in (jnp.dtype(jnp.float32), jnp.dtype(jnp.bfloat16),
                               jnp.dtype(jnp.float16))
        ret_dtype = store_dtype

    xf = x.reshape(-1, 3).astype(jnp.float32)
    m = xf.shape[0]

    # Pad only to ROW_Q lane-rows (<= ROW_Q*128 - 1 dead points), never to a
    # tile multiple; the ragged last grid block is handled by Pallas.
    rows = max(ROW_Q, _round_up(pl.cdiv(m, LANE), ROW_Q))
    mp = rows * LANE
    if mp != m:
        xf = jnp.pad(xf, ((0, mp - m), (0, 0)))

    default_tr, vmem_limit = _select_tiling()
    if tile_rows is None:
        # keep >= ~4 grid steps on large inputs (megacore + pipeline)
        tr = min(default_tr, _round_up(pl.cdiv(rows, 4), ROW_Q))
    else:
        tr = _round_up(max(int(tile_rows), 1), ROW_Q)
    tr = max(ROW_Q, min(tr, rows))
    grid = (pl.cdiv(rows, tr),)

    chunk = math.gcd(tr, CHUNK_ROWS)
    n_chunks = tr // chunk

    # (3, rows, 128): points on the lane axis, dense (8,128) vregs.
    # (If the producer can hand over coordinate-major (3, N) directly, this
    # wrapper-side transpose disappears; do NOT feed (m, 3) blocks instead.)
    xt = xf.T.reshape(3, rows, LANE)

    out = pl.pallas_call(
        _make_kernel(chunk, n_chunks),
        out_shape=jax.ShapeDtypeStruct((NFEAT, rows, LANE), store_dtype),
        grid=grid,
        in_specs=[pl.BlockSpec((3, tr, LANE), lambda i: (0, i, 0))],
        out_specs=pl.BlockSpec((NFEAT, tr, LANE), lambda i: (0, i, 0)),
        compiler_params=pltpu.CompilerParams(
            dimension_semantics=("parallel",),
            vmem_limit_bytes=vmem_limit,
        ),
    )(xt)

    if feature_major:
        # No transpose: row-major merge of (rows, 128) is free; the [:m] slice
        # (only when padding exists) is a contiguous copy, not a relayout.
        sh = out.reshape(NFEAT, -1)
        if mp != m:
            sh = sh[:, :m]
        return sh.astype(ret_dtype).reshape(NFEAT, *b, n)

    # Module-compatible (..., n, 16) layout: needs a feature->point transpose.
    sh = jnp.transpose(out, (1, 2, 0)).reshape(-1, NFEAT)
    if mp != m:
        sh = sh[:m]
    return sh.astype(ret_dtype).reshape(*b, n, NFEAT)


def _sh_features(x, y, z):
    """Closed-form real spherical harmonics (unit direction), up to l=3."""
    x2, y2, z2 = x * x, y * y, z * z
    return [
        jnp.full_like(x, C0_0),
        C1 * y, C1 * z, C1 * x,
        C2_M * x * y, C2_M * y * z, C2_0 * (3.0 * z2 - 1.0),
        C2_M * x * z, C2_P2 * (x2 - y2),
        C3_3 * y * (3.0 * x2 - y2), C3_M2 * x * y * z,
        C3_1 * y * (5.0 * z2 - 1.0), C3_0 * z * (5.0 * z2 - 3.0),
        C3_1 * x * (5.0 * z2 - 1.0), C3_P2 * z * (x2 - y2),
        C3_3 * x * (x2 - 3.0 * y2),
    ]


def _reference(x):
    """Pure-JAX reference with the module's semantics (for verification)."""
    *b, n, _ = x.shape
    xf = x.reshape(-1, 3).astype(jnp.float32)
    xs, ys, zs = xf[:, 2], xf[:, 0], xf[:, 1]
    rinv = jax.lax.rsqrt(xs * xs + ys * ys + zs * zs)
    xu, yu, zu = xs * rinv, ys * rinv, zs * rinv
    sh = jnp.stack(_sh_features(xu, yu, zu), axis=-1)
    sh = jnp.nan_to_num(sh, nan=0.0).astype(x.dtype)
    return sh.reshape(*b, n, NFEAT)


if __name__ == "__main__":
    key = jax.random.PRNGKey(0)
    k0, k1 = jax.random.split(key)

    # small module-shaped input, with one degenerate (zero) vector
    batch, n = 2, 128
    x = jax.random.normal(k0, (batch, n, 3), dtype=jnp.float32)
    x = x.at[0, 0].set(jnp.zeros((3,), jnp.float32))

    out = jax.block_until_ready(spherical_harmonic(x))
    ref = jax.block_until_ready(_reference(x))
    assert out.shape == (batch, n, NFEAT)
    assert jnp.allclose(out, ref, atol=1e-5, rtol=1e-5), "mismatch vs reference"

    # feature-major fast path (no epilogue transpose)
    out_fm = jax.block_until_ready(spherical_harmonic(x, feature_major=True))
    assert out_fm.shape == (NFEAT, batch, n)
    assert jnp.allclose(out_fm, jnp.moveaxis(ref, -1, 0), atol=1e-5, rtol=1e-5)

    # non-multiple-of-128 point count + ragged last grid block (rows=48, tr=32)
    x2 = jax.random.normal(k1, (1, 5000, 3), dtype=jnp.float32)
    out2 = jax.block_until_ready(spherical_harmonic(x2, tile_rows=32))
    ref2 = _reference(x2)
    assert out2.shape == (1, 5000, NFEAT)
    assert jnp.allclose(out2, ref2, atol=1e-5, rtol=1e-5), "ragged-grid mismatch"

    # bf16 caller path (output stored in bf16 by the kernel): smoke test
    xb = x.astype(jnp.bfloat16)
    outb = jax.block_until_ready(spherical_harmonic(xb))
    assert outb.shape == (batch, n, NFEAT) and outb.dtype == jnp.bfloat16
    assert bool(jnp.all(jnp.isfinite(outb.astype(jnp.float32))))

    print("KERNEL_OK")
</pallas_src>

<mosaic_0001>
module attributes {stable_mosaic.version = 11 : i64} {
  func.func @kernel(%arg0: i32, %arg1: memref<3x16x128xf32, #tpu.memory_space<vmem>>, %arg2: memref<16x16x128xf32, #tpu.memory_space<vmem>>) attributes {dimension_semantics = [#tpu.dimension_semantics<parallel>], iteration_bounds = array<i64: 1>, scalar_prefetch = 0 : i64, scratch_operands = 0 : i64, tpu.core_type = #tpu.core_type<tc>, window_params = [{transform_indices = @transform_0, window_bounds = array<i64: 3, 16, 128>}, {transform_indices = @transform_1, window_bounds = array<i64: 16, 16, 128>}]} {
    %c0_i32 = arith.constant 0 : i32
    %c16_i32 = arith.constant 16 : i32
    %0 = arith.muli %c0_i32, %c16_i32 : i32
    %1 = tpu.assume_multiple %0, 16 : i32
    %c2 = arith.constant 2 : index
    %2 = arith.index_cast %1 : i32 to index
    %c0 = arith.constant 0 : index
    %3 = vector.load %arg1[%c2, %2, %c0] : memref<3x16x128xf32, #tpu.memory_space<vmem>>, vector<1x16x128xf32>
    %4 = vector.shape_cast %3 : vector<1x16x128xf32> to vector<16x128xf32>
    %c0_0 = arith.constant 0 : index
    %5 = arith.index_cast %1 : i32 to index
    %c0_1 = arith.constant 0 : index
    %6 = vector.load %arg1[%c0_0, %5, %c0_1] : memref<3x16x128xf32, #tpu.memory_space<vmem>>, vector<1x16x128xf32>
    %7 = vector.shape_cast %6 : vector<1x16x128xf32> to vector<16x128xf32>
    %c1 = arith.constant 1 : index
    %8 = arith.index_cast %1 : i32 to index
    %c0_2 = arith.constant 0 : index
    %9 = vector.load %arg1[%c1, %8, %c0_2] : memref<3x16x128xf32, #tpu.memory_space<vmem>>, vector<1x16x128xf32>
    %10 = vector.shape_cast %9 : vector<1x16x128xf32> to vector<16x128xf32>
    %11 = arith.mulf %4, %4 : vector<16x128xf32>
    %12 = arith.mulf %7, %7 : vector<16x128xf32>
    %13 = arith.addf %11, %12 : vector<16x128xf32>
    %14 = arith.mulf %10, %10 : vector<16x128xf32>
    %15 = arith.addf %13, %14 : vector<16x128xf32>
    %cst = arith.constant 0.000000e+00 : f32
    %16 = vector.broadcast %cst : f32 to vector<16x128xf32>
    %17 = arith.cmpf oeq, %15, %16 : vector<16x128xf32>
    %18 = math.rsqrt %15 : vector<16x128xf32>
    %cst_3 = arith.constant 0.000000e+00 : f32
    %19 = vector.broadcast %cst_3 : f32 to vector<16x128xf32>
    %20 = arith.select %17, %19, %18 : vector<16x128xi1>, vector<16x128xf32>
    %21 = arith.mulf %4, %20 : vector<16x128xf32>
    %22 = arith.mulf %7, %20 : vector<16x128xf32>
    %23 = arith.mulf %10, %20 : vector<16x128xf32>
    %24 = arith.mulf %21, %21 : vector<16x128xf32>
    %25 = arith.mulf %22, %22 : vector<16x128xf32>
    %26 = arith.mulf %23, %23 : vector<16x128xf32>
    %27 = arith.mulf %21, %22 : vector<16x128xf32>
    %28 = arith.mulf %22, %23 : vector<16x128xf32>
    %29 = arith.mulf %21, %23 : vector<16x128xf32>
    %30 = arith.subf %24, %25 : vector<16x128xf32>
    %cst_4 = arith.constant 5.000000e+00 : f32
    %31 = vector.broadcast %cst_4 : f32 to vector<16x128xf32>
    %32 = arith.mulf %31, %26 : vector<16x128xf32>
    %cst_5 = arith.constant 1.000000e+00 : f32
    %33 = vector.broadcast %cst_5 : f32 to vector<16x128xf32>
    %34 = arith.subf %32, %33 : vector<16x128xf32>
    %cst_6 = arith.constant 0.282094806 : f32
    %35 = vector.broadcast %cst_6 : f32 to vector<16x128xf32>
    %c0_7 = arith.constant 0 : index
    %36 = arith.index_cast %1 : i32 to index
    %c0_8 = arith.constant 0 : index
    %37 = vector.load %arg2[%c0_7, %36, %c0_8] : memref<16x16x128xf32, #tpu.memory_space<vmem>>, vector<1x16x128xf32>
    %38 = vector.shape_cast %37 : vector<1x16x128xf32> to vector<16x128xf32>
    %39 = vector.shape_cast %35 : vector<16x128xf32> to vector<1x16x128xf32>
    tpu.vector_store %arg2[%c0_7, %36, %c0_8], %39 {strides = array<i32>} : memref<16x16x128xf32, #tpu.memory_space<vmem>>, vector<1x16x128xf32>,
    %cst_9 = arith.constant 0.488602519 : f32
    %40 = vector.broadcast %cst_9 : f32 to vector<16x128xf32>
    %41 = arith.mulf %40, %22 : vector<16x128xf32>
    %c1_10 = arith.constant 1 : index
    %42 = arith.index_cast %1 : i32 to index
    %c0_11 = arith.constant 0 : index
    %43 = vector.load %arg2[%c1_10, %42, %c0_11] : memref<16x16x128xf32, #tpu.memory_space<vmem>>, vector<1x16x128xf32>
    %44 = vector.shape_cast %43 : vector<1x16x128xf32> to vector<16x128xf32>
    %45 = vector.shape_cast %41 : vector<16x128xf32> to vector<1x16x128xf32>
    tpu.vector_store %arg2[%c1_10, %42, %c0_11], %45 {strides = array<i32>} : memref<16x16x128xf32, #tpu.memory_space<vmem>>, vector<1x16x128xf32>,
    %cst_12 = arith.constant 0.488602519 : f32
    %46 = vector.broadcast %cst_12 : f32 to vector<16x128xf32>
    %47 = arith.mulf %46, %23 : vector<16x128xf32>
    %c2_13 = arith.constant 2 : index
    %48 = arith.index_cast %1 : i32 to index
    %c0_14 = arith.constant 0 : index
    %49 = vector.load %arg2[%c2_13, %48, %c0_14] : memref<16x16x128xf32, #tpu.memory_space<vmem>>, vector<1x16x128xf32>
    %50 = vector.shape_cast %49 : vector<1x16x128xf32> to vector<16x128xf32>
    %51 = vector.shape_cast %47 : vector<16x128xf32> to vector<1x16x128xf32>
    tpu.vector_store %arg2[%c2_13, %48, %c0_14], %51 {strides = array<i32>} : memref<16x16x128xf32, #tpu.memory_space<vmem>>, vector<1x16x128xf32>,
    %cst_15 = arith.constant 0.488602519 : f32
    %52 = vector.broadcast %cst_15 : f32 to vector<16x128xf32>
    %53 = arith.mulf %52, %21 : vector<16x128xf32>
    %c3 = arith.constant 3 : index
    %54 = arith.index_cast %1 : i32 to index
    %c0_16 = arith.constant 0 : index
    %55 = vector.load %arg2[%c3, %54, %c0_16] : memref<16x16x128xf32, #tpu.memory_space<vmem>>, vector<1x16x128xf32>
    %56 = vector.shape_cast %55 : vector<1x16x128xf32> to vector<16x128xf32>
    %57 = vector.shape_cast %53 : vector<16x128xf32> to vector<1x16x128xf32>
    tpu.vector_store %arg2[%c3, %54, %c0_16], %57 {strides = array<i32>} : memref<16x16x128xf32, #tpu.memory_space<vmem>>, vector<1x16x128xf32>,
    %cst_17 = arith.constant 1.09254849 : f32
    %58 = vector.broadcast %cst_17 : f32 to vector<16x128xf32>
    %59 = arith.mulf %58, %27 : vector<16x128xf32>
    %c4 = arith.constant 4 : index
    %60 = arith.index_cast %1 : i32 to index
    %c0_18 = arith.constant 0 : index
    %61 = vector.load %arg2[%c4, %60, %c0_18] : memref<16x16x128xf32, #tpu.memory_space<vmem>>, vector<1x16x128xf32>
    %62 = vector.shape_cast %61 : vector<1x16x128xf32> to vector<16x128xf32>
    %63 = vector.shape_cast %59 : vector<16x128xf32> to vector<1x16x128xf32>
    tpu.vector_store %arg2[%c4, %60, %c0_18], %63 {strides = array<i32>} : memref<16x16x128xf32, #tpu.memory_space<vmem>>, vector<1x16x128xf32>,
    %cst_19 = arith.constant 1.09254849 : f32
    %64 = vector.broadcast %cst_19 : f32 to vector<16x128xf32>
    %65 = arith.mulf %64, %28 : vector<16x128xf32>
    %c5 = arith.constant 5 : index
    %66 = arith.index_cast %1 : i32 to index
    %c0_20 = arith.constant 0 : index
    %67 = vector.load %arg2[%c5, %66, %c0_20] : memref<16x16x128xf32, #tpu.memory_space<vmem>>, vector<1x16x128xf32>
    %68 = vector.shape_cast %67 : vector<1x16x128xf32> to vector<16x128xf32>
    %69 = vector.shape_cast %65 : vector<16x128xf32> to vector<1x16x128xf32>
    tpu.vector_store %arg2[%c5, %66, %c0_20], %69 {strides = array<i32>} : memref<16x16x128xf32, #tpu.memory_space<vmem>>, vector<1x16x128xf32>,
    %cst_21 = arith.constant 3.000000e+00 : f32
    %70 = vector.broadcast %cst_21 : f32 to vector<16x128xf32>
    %71 = arith.mulf %70, %26 : vector<16x128xf32>
    %cst_22 = arith.constant 1.000000e+00 : f32
    %72 = vector.broadcast %cst_22 : f32 to vector<16x128xf32>
    %73 = arith.subf %71, %72 : vector<16x128xf32>
    %cst_23 = arith.constant 0.31539157 : f32
    %74 = vector.broadcast %cst_23 : f32 to vector<16x128xf32>
    %75 = arith.mulf %74, %73 : vector<16x128xf32>
    %cst_24 = arith.constant 0.000000e+00 : f32
    %76 = vector.broadcast %cst_24 : f32 to vector<16x128xf32>
    %77 = arith.select %17, %76, %75 : vector<16x128xi1>, vector<16x128xf32>
    %c6 = arith.constant 6 : index
    %78 = arith.index_cast %1 : i32 to index
    %c0_25 = arith.constant 0 : index
    %79 = vector.load %arg2[%c6, %78, %c0_25] : memref<16x16x128xf32, #tpu.memory_space<vmem>>, vector<1x16x128xf32>
    %80 = vector.shape_cast %79 : vector<1x16x128xf32> to vector<16x128xf32>
    %81 = vector.shape_cast %77 : vector<16x128xf32> to vector<1x16x128xf32>
    tpu.vector_store %arg2[%c6, %78, %c0_25], %81 {strides = array<i32>} : memref<16x16x128xf32, #tpu.memory_space<vmem>>, vector<1x16x128xf32>,
    %cst_26 = arith.constant 1.09254849 : f32
    %82 = vector.broadcast %cst_26 : f32 to vector<16x128xf32>
    %83 = arith.mulf %82, %29 : vector<16x128xf32>
    %c7 = arith.constant 7 : index
    %84 = arith.index_cast %1 : i32 to index
    %c0_27 = arith.constant 0 : index
    %85 = vector.load %arg2[%c7, %84, %c0_27] : memref<16x16x128xf32, #tpu.memory_space<vmem>>, vector<1x16x128xf32>
    %86 = vector.shape_cast %85 : vector<1x16x128xf32> to vector<16x128xf32>
    %87 = vector.shape_cast %83 : vector<16x128xf32> to vector<1x16x128xf32>
    tpu.vector_store %arg2[%c7, %84, %c0_27], %87 {strides = array<i32>} : memref<16x16x128xf32, #tpu.memory_space<vmem>>, vector<1x16x128xf32>,
    %cst_28 = arith.constant 0.546274245 : f32
    %88 = vector.broadcast %cst_28 : f32 to vector<16x128xf32>
    %89 = arith.mulf %88, %30 : vector<16x128xf32>
    %c8 = arith.constant 8 : index
    %90 = arith.index_cast %1 : i32 to index
    %c0_29 = arith.constant 0 : index
    %91 = vector.load %arg2[%c8, %90, %c0_29] : memref<16x16x128xf32, #tpu.memory_space<vmem>>, vector<1x16x128xf32>
    %92 = vector.shape_cast %91 : vector<1x16x128xf32> to vector<16x128xf32>
    %93 = vector.shape_cast %89 : vector<16x128xf32> to vector<1x16x128xf32>
    tpu.vector_store %arg2[%c8, %90, %c0_29], %93 {strides = array<i32>} : memref<16x16x128xf32, #tpu.memory_space<vmem>>, vector<1x16x128xf32>,
    %cst_30 = arith.constant 0.590043604 : f32
    %94 = vector.broadcast %cst_30 : f32 to vector<16x128xf32>
    %95 = arith.mulf %94, %22 : vector<16x128xf32>
    %cst_31 = arith.constant 3.000000e+00 : f32
    %96 = vector.broadcast %cst_31 : f32 to vector<16x128xf32>
    %97 = arith.mulf %96, %24 : vector<16x128xf32>
    %98 = arith.subf %97, %25 : vector<16x128xf32>
    %99 = arith.mulf %95, %98 : vector<16x128xf32>
    %c9 = arith.constant 9 : index
    %100 = arith.index_cast %1 : i32 to index
    %c0_32 = arith.constant 0 : index
    %101 = vector.load %arg2[%c9, %100, %c0_32] : memref<16x16x128xf32, #tpu.memory_space<vmem>>, vector<1x16x128xf32>
    %102 = vector.shape_cast %101 : vector<1x16x128xf32> to vector<16x128xf32>
    %103 = vector.shape_cast %99 : vector<16x128xf32> to vector<1x16x128xf32>
    tpu.vector_store %arg2[%c9, %100, %c0_32], %103 {strides = array<i32>} : memref<16x16x128xf32, #tpu.memory_space<vmem>>, vector<1x16x128xf32>,
    %cst_33 = arith.constant 2.89061141 : f32
    %104 = vector.broadcast %cst_33 : f32 to vector<16x128xf32>
    %105 = arith.mulf %104, %27 : vector<16x128xf32>
    %106 = arith.mulf %105, %23 : vector<16x128xf32>
    %c10 = arith.constant 10 : index
    %107 = arith.index_cast %1 : i32 to index
    %c0_34 = arith.constant 0 : index
    %108 = vector.load %arg2[%c10, %107, %c0_34] : memref<16x16x128xf32, #tpu.memory_space<vmem>>, vector<1x16x128xf32>
    %109 = vector.shape_cast %108 : vector<1x16x128xf32> to vector<16x128xf32>
    %110 = vector.shape_cast %106 : vector<16x128xf32> to vector<1x16x128xf32>
    tpu.vector_store %arg2[%c10, %107, %c0_34], %110 {strides = array<i32>} : memref<16x16x128xf32, #tpu.memory_space<vmem>>, vector<1x16x128xf32>,
    %cst_35 = arith.constant 0.457045794 : f32
    %111 = vector.broadcast %cst_35 : f32 to vector<16x128xf32>
    %112 = arith.mulf %111, %22 : vector<16x128xf32>
    %113 = arith.mulf %112, %34 : vector<16x128xf32>
    %c11 = arith.constant 11 : index
    %114 = arith.index_cast %1 : i32 to index
    %c0_36 = arith.constant 0 : index
    %115 = vector.load %arg2[%c11, %114, %c0_36] : memref<16x16x128xf32, #tpu.memory_space<vmem>>, vector<1x16x128xf32>
    %116 = vector.shape_cast %115 : vector<1x16x128xf32> to vector<16x128xf32>
    %117 = vector.shape_cast %113 : vector<16x128xf32> to vector<1x16x128xf32>
    tpu.vector_store %arg2[%c11, %114, %c0_36], %117 {strides = array<i32>} : memref<16x16x128xf32, #tpu.memory_space<vmem>>, vector<1x16x128xf32>,
    %cst_37 = arith.constant 0.373176336 : f32
    %118 = vector.broadcast %cst_37 : f32 to vector<16x128xf32>
    %119 = arith.mulf %118, %23 : vector<16x128xf32>
    %cst_38 = arith.constant 5.000000e+00 : f32
    %120 = vector.broadcast %cst_38 : f32 to vector<16x128xf32>
    %121 = arith.mulf %120, %26 : vector<16x128xf32>
    %cst_39 = arith.constant 3.000000e+00 : f32
    %122 = vector.broadcast %cst_39 : f32 to vector<16x128xf32>
    %123 = arith.subf %121, %122 : vector<16x128xf32>
    %124 = arith.mulf %119, %123 : vector<16x128xf32>
    %c12 = arith.constant 12 : index
    %125 = arith.index_cast %1 : i32 to index
    %c0_40 = arith.constant 0 : index
    %126 = vector.load %arg2[%c12, %125, %c0_40] : memref<16x16x128xf32, #tpu.memory_space<vmem>>, vector<1x16x128xf32>
    %127 = vector.shape_cast %126 : vector<1x16x128xf32> to vector<16x128xf32>
    %128 = vector.shape_cast %124 : vector<16x128xf32> to vector<1x16x128xf32>
    tpu.vector_store %arg2[%c12, %125, %c0_40], %128 {strides = array<i32>} : memref<16x16x128xf32, #tpu.memory_space<vmem>>, vector<1x16x128xf32>,
    %cst_41 = arith.constant 0.457045794 : f32
    %129 = vector.broadcast %cst_41 : f32 to vector<16x128xf32>
    %130 = arith.mulf %129, %21 : vector<16x128xf32>
    %131 = arith.mulf %130, %34 : vector<16x128xf32>
    %c13 = arith.constant 13 : index
    %132 = arith.index_cast %1 : i32 to index
    %c0_42 = arith.constant 0 : index
    %133 = vector.load %arg2[%c13, %132, %c0_42] : memref<16x16x128xf32, #tpu.memory_space<vmem>>, vector<1x16x128xf32>
    %134 = vector.shape_cast %133 : vector<1x16x128xf32> to vector<16x128xf32>
    %135 = vector.shape_cast %131 : vector<16x128xf32> to vector<1x16x128xf32>
    tpu.vector_store %arg2[%c13, %132, %c0_42], %135 {strides = array<i32>} : memref<16x16x128xf32, #tpu.memory_space<vmem>>, vector<1x16x128xf32>,
    %cst_43 = arith.constant 1.44530571 : f32
    %136 = vector.broadcast %cst_43 : f32 to vector<16x128xf32>
    %137 = arith.mulf %136, %23 : vector<16x128xf32>
    %138 = arith.mulf %137, %30 : vector<16x128xf32>
    %c14 = arith.constant 14 : index
    %139 = arith.index_cast %1 : i32 to index
    %c0_44 = arith.constant 0 : index
    %140 = vector.load %arg2[%c14, %139, %c0_44] : memref<16x16x128xf32, #tpu.memory_space<vmem>>, vector<1x16x128xf32>
    %141 = vector.shape_cast %140 : vector<1x16x128xf32> to vector<16x128xf32>
    %142 = vector.shape_cast %138 : vector<16x128xf32> to vector<1x16x128xf32>
    tpu.vector_store %arg2[%c14, %139, %c0_44], %142 {strides = array<i32>} : memref<16x16x128xf32, #tpu.memory_space<vmem>>, vector<1x16x128xf32>,
    %cst_45 = arith.constant 0.590043604 : f32
    %143 = vector.broadcast %cst_45 : f32 to vector<16x128xf32>
    %144 = arith.mulf %143, %21 : vector<16x128xf32>
    %cst_46 = arith.constant 3.000000e+00 : f32
    %145 = vector.broadcast %cst_46 : f32 to vector<16x128xf32>
    %146 = arith.mulf %145, %25 : vector<16x128xf32>
    %147 = arith.subf %24, %146 : vector<16x128xf32>
    %148 = arith.mulf %144, %147 : vector<16x128xf32>
    %c15 = arith.constant 15 : index
    %149 = arith.index_cast %1 : i32 to index
    %c0_47 = arith.constant 0 : index
    %150 = vector.load %arg2[%c15, %149, %c0_47] : memref<16x16x128xf32, #tpu.memory_space<vmem>>, vector<1x16x128xf32>
    %151 = vector.shape_cast %150 : vector<1x16x128xf32> to vector<16x128xf32>
    %152 = vector.shape_cast %148 : vector<16x128xf32> to vector<1x16x128xf32>
    tpu.vector_store %arg2[%c15, %149, %c0_47], %152 {strides = array<i32>} : memref<16x16x128xf32, #tpu.memory_space<vmem>>, vector<1x16x128xf32>,
    %c1_i32 = arith.constant 1 : i32
    return
  }
  func.func @transform_0(%arg0: i32) -> (i32, i32, i32) {
    %c0_i32 = arith.constant 0 : i32
    %c0_i32_0 = arith.constant 0 : i32
    %c0_i32_1 = arith.constant 0 : i32
    return %c0_i32, %arg0, %c0_i32_0 : i32, i32, i32
  }
  func.func @transform_1(%arg0: i32) -> (i32, i32, i32) {
    %c0_i32 = arith.constant 0 : i32
    %c0_i32_0 = arith.constant 0 : i32
    %c0_i32_1 = arith.constant 0 : i32
    return %c0_i32, %arg0, %c0_i32_0 : i32, i32, i32
  }
}

</mosaic_0001>

<bundles_post_ra>
// kernel: tpu_custom_call.1
= control target key start
LH: loop header
LB: loop body
LE: loop exit
PB: predicated region body
PF: predicated region fallthrough
CT: control target
= control target key end

     0   :  { %6 = vsyncpa [#allocation3], 0  ;;  %s395_s0 = inlined_call_operand.hbm [shape: f32[3,16,128], index: 0, kind: input, shape index: {}]   ;;  %s396_s1 = inlined_call_operand.hbm [shape: f32[16,16,128], index: 1, kind: output, shape index: {}]  }
   0x1   :  { %7 = vsyncpa [#allocation4], 0  ;;  %s286_s6 = smov [#allocation2]  }
   0x2   :  { %s13_s7 = sshll.u32 %s286_s6, 4  ;;  %s14_s7 = int_to_ptr.vmem [resolvable:$true] %s13_s7 }
   0x3   :  { %s250_s8 = scalar_lea.vmem %s14_s7, 768  ;;  %p255_p1 = scmp.lt.s32.totalorder %s14_s7, %s14_s7 }
   0x4   :  { %p251_p0 = scmp.ne.s32.totalorder %s14_s7, %s250_s8  ;;  %p256_p2 = scmp.lt.s32.totalorder %s250_s8, %s250_s8 }
   0x6   :  { %p257_p3 = por %p256_p2, %p255_p1 }
   0x8   :  { %p258_p4 = pnand %p257_p3, %p251_p0 }
   0xa   :  { %261 = shalt.err (!%p258_p4)
}
   0xb   :  { %s287_s9 = smov 128   ;;  %s288_s10 = smov 8  }
   0xc   :  { %19 = dma.hbm_to_vmem [thread:$0]  %s395_s0, 768, %s14_s7, [#allocation3], %s287_s9, %s287_s9, %s288_s10  }
   0xd   :  { %282 = dma.done.wait [#allocation3], 768  }
   0xe   :  { %283 = vsyncadd [#allocation3], 4294966528  ;;  %v289_v0 = vmov 0.2820948   ;;  %v25_v1 = vld [vmem:[#allocation2 + $0x20] sm:$0xff]  ;;  %v31_v3 = vld [vmem:[#allocation2 + $0x10] sm:$0xff] }
   0xf   :  { %73 = vst [vmem:[#allocation5] sm:$0xff] %v289_v0  ;;  %74 = vst [vmem:[#allocation5 + $0x8] sm:$0xff] %v289_v0  ;;  %v27_v2 = vld [vmem:[#allocation2] sm:$0xff]  ;;  %v33_v4 = vmul.f32 %v25_v1, %v25_v1  ;;  %v39_v6 = vmul.f32 %v31_v3, %v31_v3  ;;  %v26_v7 = vld [vmem:[#allocation2 + $0x28] sm:$0xff]  ;;  %s290_s0 = smov [#allocation5]  }
  0x10   :  { %v35_v5 = vmul.f32 %v27_v2, %v27_v2  ;;  %v28_v8 = vld [vmem:[#allocation2 + $0x8] sm:$0xff]  ;;  %v32_v9 = vld [vmem:[#allocation2 + $0x18] sm:$0xff]  ;;  %v34_v10 = vmul.f32 %v26_v7, %v26_v7  ;;  %s198_s13 = sshll.u32 %s290_s0, 4  ;;  %s199_s13 = int_to_ptr.vmem [resolvable:$true] %s198_s13 }
  0x11   :  { %v36_v11 = vmul.f32 %v28_v8, %v28_v8  ;;  %v40_v12 = vmul.f32 %v32_v9, %v32_v9  ;;  %s262_s14 = scalar_lea.vmem %s199_s13, 4096  ;;  %p267_p6 = scmp.lt.s32.totalorder %s199_s13, %s199_s13 }
  0x12   :  { %v37_v13 = vadd.f32 %v35_v5, %v33_v4  ;;  %p263_p5 = scmp.ne.s32.totalorder %s199_s13, %s262_s14  ;;  %p268_p7 = scmp.lt.s32.totalorder %s262_s14, %s262_s14 }
  0x13   :  { %v38_v14 = vadd.f32 %v36_v11, %v34_v10 }
  0x14   :  { %v307_v15 = vadd.f32 %v39_v6, %v37_v13  ;;  %p269_p8 = por %p268_p7, %p267_p6 }
  0x15   :  { %v309_v16 = vadd.f32 %v40_v12, %v38_v14 }
  0x16   :  { %238 = vrsqrt.f32 %v307_v15  ;;  %vm43_vm0 = vcmp.eq.f32.partialorder %v307_v15, 0.0  ;;  %p270_p9 = pnand %p269_p8, %p263_p5 }
  0x17   :  { %240 = vrsqrt.f32 %v309_v16  ;;  %vm44_vm1 = vcmp.eq.f32.partialorder %v309_v16, 0.0 }
  0x23   :  { %v239_v17 = vpop.eup %238 }
  0x24   :  { %v241_v18 = vpop.eup %240  ;;  %v47_v19 = vsel %vm43_vm0, 0.0, %v239_v17 }
  0x25   :  { %v317_v20 = vmul.f32 %v47_v19, %v27_v2  ;;  %v319_v21 = vmul.f32 %v47_v19, %v31_v3  ;;  %v48_v22 = vsel %vm44_vm1, 0.0, %v241_v18  ;;  %v323_v23 = vmul.f32 %v47_v19, %v25_v1 }
  0x26   :  { %v325_v24 = vmul.f32 %v48_v22, %v28_v8  ;;  %v327_v25 = vmul.f32 %v48_v22, %v32_v9  ;;  %v329_v26 = vmul.f32 %v48_v22, %v26_v7 }
  0x27   :  { %v75_v27 = vmul.f32 0.48860252, %v317_v20  ;;  %v80_v28 = vmul.f32 0.48860252, %v319_v21  ;;  %v85_v29 = vmul.f32 0.48860252, %v323_v23  ;;  %v61_v30 = vmul.f32 %v317_v20, %v323_v23 }
  0x28   :  { %v76_v31 = vmul.f32 0.48860252, %v325_v24  ;;  %v81_v32 = vmul.f32 0.48860252, %v327_v25  ;;  %v86_v33 = vmul.f32 0.48860252, %v329_v26  ;;  %v62_v34 = vmul.f32 %v325_v24, %v329_v26 }
  0x29   :  { %78 = vst [vmem:[#allocation5 + $0x10] sm:$0xff] %v75_v27  ;;  %83 = vst [vmem:[#allocation5 + $0x20] sm:$0xff] %v80_v28  ;;  %v91_v35 = vmul.f32 1.0925485, %v61_v30  ;;  %v63_v36 = vmul.f32 %v319_v21, %v317_v20  ;;  %v64_v37 = vmul.f32 %v327_v25, %v325_v24  ;;  %v59_v38 = vmul.f32 %v319_v21, %v319_v21 }
  0x2a   :  { %89 = vst [vmem:[#allocation5 + $0x30] sm:$0xff] %v85_v29  ;;  %79 = vst [vmem:[#allocation5 + $0x18] sm:$0xff] %v76_v31  ;;  %v92_v39 = vmul.f32 1.0925485, %v62_v34  ;;  %v60_v40 = vmul.f32 %v327_v25, %v327_v25  ;;  %v65_v41 = vmul.f32 %v319_v21, %v323_v23  ;;  %v66_v42 = vmul.f32 %v327_v25, %v329_v26 }
  0x2b   :  { %84 = vst [vmem:[#allocation5 + $0x28] sm:$0xff] %v81_v32  ;;  %90 = vst [vmem:[#allocation5 + $0x38] sm:$0xff] %v86_v33  ;;  %v97_v43 = vmul.f32 1.0925485, %v63_v36  ;;  %v98_v44 = vmul.f32 1.0925485, %v64_v37  ;;  %v355_v46 = vmul.f32 %v323_v23, %v323_v23  ;;  %v57_v50 = vmul.f32 %v317_v20, %v317_v20 }
  0x2c   :  { %95 = vst [vmem:[#allocation5 + $0x40] sm:$0xff] %v91_v35  ;;  %v103_v45 = vmul.f32 3.0, %v59_v38  ;;  %96 = vst [vmem:[#allocation5 + $0x48] sm:$0xff] %v92_v39  ;;  %v104_v47 = vmul.f32 3.0, %v60_v40  ;;  %v115_v48 = vmul.f32 1.0925485, %v65_v41  ;;  %v361_v52 = vmul.f32 %v329_v26, %v329_v26 }
  0x2d   :  { %v116_v49 = vmul.f32 1.0925485, %v66_v42  ;;  %101 = vst [vmem:[#allocation5 + $0x50] sm:$0xff] %v97_v43  ;;  %102 = vst [vmem:[#allocation5 + $0x58] sm:$0xff] %v98_v44  ;;  %v58_v53 = vmul.f32 %v325_v24, %v325_v24  ;;  %v127_v54 = vmul.f32 0.5900436, %v317_v20  ;;  %v67_v56 = vsub.f32 %v355_v46, %v57_v50 }
  0x2e   :  { %v229_v51 = vadd.f32 -1.0, %v103_v45  ;;  %v230_v55 = vadd.f32 -1.0, %v104_v47  ;;  %119 = vst [vmem:[#allocation5 + $0x70] sm:$0xff] %v115_v48  ;;  %v129_v57 = vmul.f32 3.0, %v355_v46  ;;  %v128_v58 = vmul.f32 0.5900436, %v325_v24 }
  0x2f   :  { %120 = vst [vmem:[#allocation5 + $0x78] sm:$0xff] %v116_v49  ;;  %v68_v60 = vsub.f32 %v361_v52, %v58_v53  ;;  %v130_v61 = vmul.f32 3.0, %v361_v52  ;;  %v139_v62 = vmul.f32 2.8906114, %v61_v30  ;;  %v121_v0 = vmul.f32 0.54627424, %v67_v56 }
  0x30   :  { %v107_v59 = vmul.f32 0.31539157, %v229_v51  ;;  %v108_v63 = vmul.f32 0.31539157, %v230_v55  ;;  %v131_v1 = vsub.f32 %v129_v57, %v57_v50  ;;  %v140_v2 = vmul.f32 2.8906114, %v62_v34 }
  0x31   :  { %v122_v4 = vmul.f32 0.54627424, %v68_v60  ;;  %v132_v5 = vsub.f32 %v130_v61, %v58_v53  ;;  %v141_v6 = vmul.f32 %v139_v62, %v319_v21  ;;  %125 = vst [vmem:[#allocation5 + $0x80] sm:$0xff] %v121_v0  ;;  %v69_v10 = vmul.f32 5.0, %v59_v38 }
  0x32   :  { %v109_v3 = vsel %vm43_vm0, 0.0, %v107_v59  ;;  %v110_v7 = vsel %vm44_vm1, 0.0, %v108_v63  ;;  %v133_v8 = vmul.f32 %v131_v1, %v127_v54  ;;  %v142_v9 = vmul.f32 %v140_v2, %v327_v25 }
  0x33   :  { %113 = vst [vmem:[#allocation5 + $0x60] sm:$0xff] %v109_v3  ;;  %114 = vst [vmem:[#allocation5 + $0x68] sm:$0xff] %v110_v7  ;;  %v134_v11 = vmul.f32 %v132_v5, %v128_v58  ;;  %v147_v12 = vmul.f32 0.4570458, %v317_v20  ;;  %v70_v13 = vmul.f32 5.0, %v60_v40  ;;  %v227_v15 = vadd.f32 -1.0, %v69_v10 }
  0x34   :  { %126 = vst [vmem:[#allocation5 + $0x88] sm:$0xff] %v122_v4  ;;  %145 = vst [vmem:[#allocation5 + $0xa0] sm:$0xff] %v141_v6  ;;  %v148_v14 = vmul.f32 0.4570458, %v325_v24  ;;  %v155_v16 = vmul.f32 0.37317634, %v319_v21 }
  0x35   :  { %137 = vst [vmem:[#allocation5 + $0x90] sm:$0xff] %v133_v8  ;;  %146 = vst [vmem:[#allocation5 + $0xa8] sm:$0xff] %v142_v9  ;;  %v231_v17 = vadd.f32 -3.0, %v69_v10  ;;  %v156_v18 = vmul.f32 0.37317634, %v327_v25  ;;  %v228_v19 = vadd.f32 -1.0, %v70_v13  ;;  %v149_v29 = vmul.f32 %v227_v15, %v147_v12 }
  0x36   :  { %138 = vst [vmem:[#allocation5 + $0x98] sm:$0xff] %v134_v11  ;;  %v232_v22 = vadd.f32 -3.0, %v70_v13  ;;  %v165_v27 = vmul.f32 0.4570458, %v323_v23  ;;  %v166_v28 = vmul.f32 0.4570458, %v329_v26 }
  0x37   :  { %v159_v20 = vmul.f32 %v231_v17, %v155_v16  ;;  %v173_v30 = vmul.f32 1.4453057, %v319_v21  ;;  %v174_v24 = vmul.f32 1.4453057, %v327_v25  ;;  %v150_v31 = vmul.f32 %v228_v19, %v148_v14  ;;  %153 = vst [vmem:[#allocation5 + $0xb0] sm:$0xff] %v149_v29 }
  0x38   :  { %v160_v32 = vmul.f32 %v232_v22, %v156_v18  ;;  %v167_v33 = vmul.f32 %v227_v15, %v165_v27  ;;  %v168_v34 = vmul.f32 %v228_v19, %v166_v28  ;;  %v181_v37 = vmul.f32 0.5900436, %v323_v23 }
  0x39   :  { %163 = vst [vmem:[#allocation5 + $0xc0] sm:$0xff] %v159_v20  ;;  %v175_v35 = vmul.f32 %v173_v30, %v67_v56  ;;  %v176_v36 = vmul.f32 %v174_v24, %v68_v60  ;;  %v183_v38 = vmul.f32 3.0, %v57_v50  ;;  %154 = vst [vmem:[#allocation5 + $0xb8] sm:$0xff] %v150_v31  ;;  %v182_v39 = vmul.f32 0.5900436, %v329_v26 }
  0x3a   :  { %164 = vst [vmem:[#allocation5 + $0xc8] sm:$0xff] %v160_v32  ;;  %171 = vst [vmem:[#allocation5 + $0xd0] sm:$0xff] %v167_v33  ;;  %v184_v21 = vmul.f32 3.0, %v58_v53 }
  0x3b   :  { %172 = vst [vmem:[#allocation5 + $0xd8] sm:$0xff] %v168_v34  ;;  %179 = vst [vmem:[#allocation5 + $0xe0] sm:$0xff] %v175_v35  ;;  %v185_v25 = vsub.f32 %v355_v46, %v183_v38 }
  0x3c   :  { %180 = vst [vmem:[#allocation5 + $0xe8] sm:$0xff] %v176_v36  ;;  %v186_v40 = vsub.f32 %v361_v52, %v184_v21 }
  0x3d   :  { %v187_v41 = vmul.f32 %v185_v25, %v181_v37 }
  0x3e   :  { %v188_v42 = vmul.f32 %v186_v40, %v182_v39 }
  0x3f   :  { %191 = vst [vmem:[#allocation5 + $0xf0] sm:$0xff] %v187_v41 }
  0x40   :  { %192 = vst [vmem:[#allocation5 + $0xf8] sm:$0xff] %v188_v42 }
  0x41   :  { %273 = shalt.err (!%p270_p9)
}
  0x42   :  { %204 = dma.vmem_to_hbm [thread:$0]  %s199_s13, 4096, %s396_s1, [#allocation4], %s287_s9, %s287_s9, %s288_s10  }
  0x43   :  { %284 = dma.done.wait [#allocation4], 4096  }
  0x44   :  { %285 = vsyncadd [#allocation4], 4294963200 }
  0x45   :  { %208 = vsyncpa [#allocation3], 1 }
  0x46   :  { %209 = vsyncpa [#allocation4], 1 }

</bundles_post_ra>
